<compile_context>
chip_gen: v5e
topology: v5e:2x2
jax: 0.10.0
libtpu: 0.0.40
codegen_flags: <defaults>
</compile_context>

<pallas_src>
import jax
import jax.numpy as jnp
from jax.experimental import pallas as pl
from jax.experimental.pallas import tpu as pltpu

IN_F = 2                              # Linear in_features
OUT_F = 2                             # Linear out_features
REP = 4                               # l1..l4 copies concatenated
OUT_W = REP * OUT_F                   # 8 output features per original row
ROWS_PER_SLAB = 64                    # 64 input rows pack into one slab row
SLAB_IN = ROWS_PER_SLAB * IN_F        # 128 input lanes  (lane-dense LHS)
SLAB_OUT = ROWS_PER_SLAB * OUT_W      # 512 output lanes (multiple of 128)
ROW_ALIGN = 8 * ROWS_PER_SLAB         # 512: keeps slab-row count a multiple of 8
TARGET_GRID_STEPS = 8                 # >=2 steps per v7x TensorCore + live pipelining


def _linear_cat_kernel(xs_ref, m_ref, b_ref, o_ref):
    # xs_ref: (T, 128)   -- 64 original (2-wide) input rows packed per slab row
    # m_ref : (128, 512) -- constant spread matrix (weights replicated/interleaved)
    # b_ref : (1, 512)   -- bias replicated to the output lane pattern
    # o_ref : (T, 512)   -- 64 original (8-wide) output rows packed per slab row
    o_ref[...] = (
        jnp.dot(xs_ref[...], m_ref[...], preferred_element_type=jnp.float32)
        + b_ref[...]
    ).astype(o_ref.dtype)


def _build_spread(weight, bias):
    """(128,512) matrix + (1,512) bias row encoding: apply Linear(2,2) to each of
    the 64 packed rows and tile the 2-wide result 4x along lanes."""
    j = jnp.arange(SLAB_OUT)
    m = jnp.arange(SLAB_IN)
    q_out = j // OUT_W            # which packed row (0..63) this output lane belongs to
    f_out = j % OUT_F             # which output feature this lane carries
    q_in = m // IN_F              # which packed row this input lane belongs to
    k_in = m % IN_F               # which input feature this input lane carries
    w_t = weight.T.astype(jnp.float32)              # (IN_F, OUT_F); w_t[k, f] = W[f, k]
    gathered = w_t[k_in[:, None], f_out[None, :]]   # (128, 512)
    spread = jnp.where(q_in[:, None] == q_out[None, :], gathered, 0.0)
    brow = bias.astype(jnp.float32)[f_out][None, :]  # (1, 512)
    return spread, brow


def model_forward(x, weight, bias, *, max_tile_rows=131072, fastpath_rows=4096):
    """x: (N, 2) f32; weight: (2, 2) PyTorch (out, in) layout; bias: (2,)."""
    n, in_f = x.shape
    assert in_f == IN_F and weight.shape == (OUT_F, IN_F) and bias.shape == (OUT_F,)

    # Small-N fast path: a fused XLA expression beats the pallas_call launch +
    # pipeline prologue on toy inputs (e.g. the module's N=2 case).
    if n <= fastpath_rows:
        y = x @ weight.T + bias
        return jnp.concatenate([y, y, y, y], axis=-1)

    # Pad rows only to ROW_ALIGN (512), never to a multiple of tile_rows: zero
    # copies when n is already aligned, <=511 padded rows otherwise.
    n_pad = pl.cdiv(n, ROW_ALIGN) * ROW_ALIGN
    x_pad = x if n_pad == n else jnp.pad(x, ((0, n_pad - n), (0, 0)))

    # Free row-major views: (N,2) -> (N/64, 128); later (N/64, 512) -> (N, 8).
    n_slab = n_pad // ROWS_PER_SLAB
    xs = x_pad.reshape(n_slab, SLAB_IN)
    spread, brow = _build_spread(weight, bias)

    # Tile sizing: as big as allowed (kernel is HBM-bound, per-step overhead is
    # the enemy) but capped so the grid keeps >= TARGET_GRID_STEPS steps for
    # v7x's two TensorCores, and so the double-buffered working set (~10 MiB at
    # 131072 rows) stays under v5e's 16 MiB scoped VMEM / v7x's 64 MiB VMEM.
    cap = max(ROW_ALIGN, (max_tile_rows // ROW_ALIGN) * ROW_ALIGN)
    want = pl.cdiv(pl.cdiv(n_pad, TARGET_GRID_STEPS), ROW_ALIGN) * ROW_ALIGN
    tile_rows = min(cap, want)
    slab_block = tile_rows // ROWS_PER_SLAB          # multiple of 8
    grid = (pl.cdiv(n_slab, slab_block),)            # ragged last block OK

    cost = pl.CostEstimate(
        flops=2 * n_slab * SLAB_IN * SLAB_OUT,
        transcendentals=0,
        bytes_accessed=4 * (n_slab * SLAB_IN + n_slab * SLAB_OUT
                            + SLAB_IN * SLAB_OUT + SLAB_OUT),
    )

    out_slab = pl.pallas_call(
        _linear_cat_kernel,
        out_shape=jax.ShapeDtypeStruct((n_slab, SLAB_OUT), jnp.float32),
        grid=grid,
        in_specs=[
            pl.BlockSpec((slab_block, SLAB_IN), lambda i: (i, 0)),
            pl.BlockSpec((SLAB_IN, SLAB_OUT), lambda i: (0, 0)),   # constant
            pl.BlockSpec((1, SLAB_OUT), lambda i: (0, 0)),         # constant
        ],
        out_specs=pl.BlockSpec((slab_block, SLAB_OUT), lambda i: (i, 0)),
        compiler_params=pltpu.CompilerParams(dimension_semantics=("parallel",)),
        cost_estimate=cost,
    )(xs, spread, brow)

    out = out_slab.reshape(n_pad, OUT_W)
    return out if n_pad == n else out[:n]


if __name__ == "__main__":
    key = jax.random.PRNGKey(0)
    kx, kw, kb, kx2 = jax.random.split(key, 4)

    # Deterministic nn.Linear(2, 2)-shaped parameters (PyTorch default uniform range).
    bound = 1.0 / (IN_F ** 0.5)
    weight = jax.random.uniform(kw, (OUT_F, IN_F), minval=-bound, maxval=bound,
                                dtype=jnp.float32)
    bias = jax.random.uniform(kb, (OUT_F,), minval=-bound, maxval=bound,
                              dtype=jnp.float32)

    def reference(xv):
        y = xv @ weight.T + bias
        return jnp.concatenate([y, y, y, y], axis=-1)

    # Module-sized input (x = torch.randn(2, 2)) -> small-N fast path.
    x = jax.random.normal(kx, (2, IN_F), dtype=jnp.float32)
    out = jax.block_until_ready(model_forward(x, weight, bias))
    assert out.shape == (2, REP * OUT_F)
    assert jnp.allclose(out, reference(x), atol=5e-3, rtol=1e-3)

    # Force the Pallas kernel path on the tiny module input as well.
    out_k = jax.block_until_ready(model_forward(x, weight, bias, fastpath_rows=0))
    assert out_k.shape == (2, REP * OUT_F)
    assert jnp.allclose(out_k, reference(x), atol=5e-3, rtol=1e-3)

    # Larger, non-aligned batch exercising multi-step grid + ragged last block.
    x_big = jax.random.normal(kx2, (10000, IN_F), dtype=jnp.float32)
    out_big = jax.block_until_ready(
        model_forward(x_big, weight, bias, fastpath_rows=0, max_tile_rows=2048))
    assert out_big.shape == (10000, REP * OUT_F)
    assert jnp.allclose(out_big, reference(x_big), atol=5e-3, rtol=1e-3)

    print("KERNEL_OK")
</pallas_src>

<mosaic_0001>
module attributes {stable_mosaic.version = 11 : i64} {
  func.func @_linear_cat_kernel(%arg0: i32, %arg1: memref<8x128xf32, #tpu.memory_space<vmem>>, %arg2: memref<128x512xf32, #tpu.memory_space<vmem>>, %arg3: memref<1x512xf32, #tpu.memory_space<vmem>>, %arg4: memref<8x512xf32, #tpu.memory_space<vmem>>) attributes {dimension_semantics = [#tpu.dimension_semantics<parallel>], iteration_bounds = array<i64: 1>, scalar_prefetch = 0 : i64, scratch_operands = 0 : i64, tpu.core_type = #tpu.core_type<tc>, window_params = [{transform_indices = @transform_0, window_bounds = array<i64: 8, 128>}, {pipeline_mode = #tpu.pipeline_mode<synchronous>, transform_indices = @transform_1, window_bounds = array<i64: 128, 512>}, {pipeline_mode = #tpu.pipeline_mode<synchronous>, transform_indices = @transform_2, window_bounds = array<i64: 1, 512>}, {transform_indices = @transform_3, window_bounds = array<i64: 8, 512>}]} {
    %c0 = arith.constant 0 : index
    %c0_0 = arith.constant 0 : index
    %0 = vector.load %arg1[%c0, %c0_0] : memref<8x128xf32, #tpu.memory_space<vmem>>, vector<8x128xf32>
    %c0_1 = arith.constant 0 : index
    %c0_2 = arith.constant 0 : index
    %1 = vector.load %arg2[%c0_1, %c0_2] : memref<128x512xf32, #tpu.memory_space<vmem>>, vector<128x512xf32>
    %cst = arith.constant dense<0.000000e+00> : vector<8x512xf32>
    %2 = tpu.matmul %0, %1, %cst {dimension_numbers = #tpu.dot_dimension_numbers<[1], [0], [0], [1], [0, 0, 1, 1], [], []>} : vector<8x128xf32>, vector<128x512xf32>, vector<8x512xf32> -> vector<8x512xf32>
    %c0_3 = arith.constant 0 : index
    %c0_4 = arith.constant 0 : index
    %3 = vector.load %arg3[%c0_3, %c0_4] : memref<1x512xf32, #tpu.memory_space<vmem>>, vector<1x512xf32>
    %4 = vector.broadcast %3 : vector<1x512xf32> to vector<8x512xf32>
    %5 = arith.addf %2, %4 : vector<8x512xf32>
    %c0_5 = arith.constant 0 : index
    %c0_6 = arith.constant 0 : index
    %6 = vector.load %arg4[%c0_5, %c0_6] : memref<8x512xf32, #tpu.memory_space<vmem>>, vector<8x512xf32>
    tpu.vector_store %arg4[%c0_5, %c0_6], %5 {strides = array<i32>} : memref<8x512xf32, #tpu.memory_space<vmem>>, vector<8x512xf32>,
    return
  }
  func.func @transform_0(%arg0: i32) -> (i32, i32) {
    %c0_i32 = arith.constant 0 : i32
    %c0_i32_0 = arith.constant 0 : i32
    return %arg0, %c0_i32 : i32, i32
  }
  func.func @transform_1(%arg0: i32) -> (i32, i32) {
    %c0_i32 = arith.constant 0 : i32
    %c0_i32_0 = arith.constant 0 : i32
    %c0_i32_1 = arith.constant 0 : i32
    return %c0_i32, %c0_i32_0 : i32, i32
  }
  func.func @transform_2(%arg0: i32) -> (i32, i32) {
    %c0_i32 = arith.constant 0 : i32
    %c0_i32_0 = arith.constant 0 : i32
    %c0_i32_1 = arith.constant 0 : i32
    return %c0_i32, %c0_i32_0 : i32, i32
  }
  func.func @transform_3(%arg0: i32) -> (i32, i32) {
    %c0_i32 = arith.constant 0 : i32
    %c0_i32_0 = arith.constant 0 : i32
    return %arg0, %c0_i32 : i32, i32
  }
}

</mosaic_0001>

<bundles_post_ra>
// kernel: tpu_custom_call.1
= control target key start
LH: loop header
LB: loop body
LE: loop exit
PB: predicated region body
PF: predicated region fallthrough
CT: control target
= control target key end

     0   :  { %8 = vsyncpa [#allocation3], 0  ;;  %s381_s0 = inlined_call_operand.hbm [shape: f32[8,128], index: 0, kind: input, shape index: {}]   ;;  %s382_s1 = inlined_call_operand.hbm [shape: f32[128,512], index: 1, kind: input, shape index: {}]   ;;  %s383_s2 = inlined_call_operand.hbm [shape: f32[1,512], index: 2, kind: input, shape index: {}]   ;;  %s384_s3 = inlined_call_operand.hbm [shape: f32[8,512], index: 3, kind: output, shape index: {}]  }
   0x1   :  { %9 = vsyncpa [#allocation6], 0  ;;  %s26_s14 = sshll.u32 %s382_s1, 4  ;;  %s27_s14 = int_to_ptr.hbm [resolvable:$true] %s26_s14 }
   0x2   :  { %10 = vsyncpa [#allocation4], 0  ;;  %s343_s15 = smov [#allocation5]   ;;  %s16_s19 = sshll.u32 %s381_s0, 4  ;;  %s17_s19 = int_to_ptr.hbm [resolvable:$true] %s16_s19 }
   0x3   :  { %s28_s16 = sshll.u32 %s343_s15, 4  ;;  %s344_s20 = smov 512   ;;  %s29_s16 = int_to_ptr.vmem [resolvable:$true] %s28_s16 }
   0x4   :  { %s345_s21 = smov 32   ;;  %s346_s22 = smov [#allocation2]  }
   0x5   :  { %34 = dma.hbm_to_vmem [thread:$0]  %s27_s14, 8192, %s29_s16, [#allocation6], %s344_s20, %s344_s20, %s345_s21  }
   0x6   :  { %s18_s23 = sshll.u32 %s346_s22, 4  ;;  %s40_s26 = sshll.u32 %s383_s2, 4  ;;  %s19_s23 = int_to_ptr.vmem [resolvable:$true] %s18_s23  ;;  %s41_s26 = int_to_ptr.hbm [resolvable:$true] %s40_s26 }
   0x7   :  { %21 = dma.hbm_to_vmem [thread:$0]  %s17_s19, 128, %s19_s23, [#allocation3]  }
   0x8   :  { %s347_s1 = smov [#allocation7]  }
   0x9   :  { %s42_s27 = sshll.u32 %s347_s1, 4  ;;  %s43_s27 = int_to_ptr.vmem [resolvable:$true] %s42_s27 }
   0xa   :  { %45 = dma.hbm_to_vmem [thread:$0]  %s41_s26, 64, %s43_s27, [#allocation6]  }
   0xb   :  { %337 = dma.done.wait [#allocation3], 128  }
   0xc   :  { %338 = vsyncadd [#allocation3], 4294967168 }
   0xd   :  { %339 = dma.done.wait [#allocation6], 8256  }
   0xe   :  { %340 = vsyncadd [#allocation6], 4294959040  ;;  %v121_v0 = vld [vmem:[#allocation5 + $0x1f0] sm:$0xff]  ;;  %v122_v1 = vld [vmem:[#allocation5 + $0x1f8] sm:$0xff]  ;;  %s348_s0 = smov [#allocation8]   ;;  %s224_s30 = sshll.u32 %s384_s3, 4  ;;  %s225_s30 = int_to_ptr.hbm [resolvable:$true] %s224_s30 }
   0xf   :  { %v117_v2 = vld [vmem:[#allocation5 + $0x1d0] sm:$0xff]  ;;  %173 = vmatpush.msra.mxu2 %v121_v0  ;;  %193 = vmatpush.msra.mxu3 %v122_v1  ;;  %v118_v3 = vld [vmem:[#allocation5 + $0x1d8] sm:$0xff]  ;;  %v119_v6 = vld [vmem:[#allocation5 + $0x1e0] sm:$0xff]  ;;  %s222_s2 = sshll.u32 %s348_s0, 4  ;;  %s223_s2 = int_to_ptr.vmem [resolvable:$true] %s222_s2 }
  0x10   :  { %v113_v4 = vld [vmem:[#allocation5 + $0x1b0] sm:$0xff]  ;;  %v114_v5 = vld [vmem:[#allocation5 + $0x1b8] sm:$0xff]  ;;  %v120_v7 = vld [vmem:[#allocation5 + $0x1e8] sm:$0xff]  ;;  %133 = vmatpush.msra.mxu0 %v119_v6 }
  0x11   :  { %174 = vmatpush.msra.mxu2 %v117_v2  ;;  %194 = vmatpush.msra.mxu3 %v118_v3  ;;  %v115_v8 = vld [vmem:[#allocation5 + $0x1c0] sm:$0xff]  ;;  %v116_v9 = vld [vmem:[#allocation5 + $0x1c8] sm:$0xff]  ;;  %v109_v10 = vld [vmem:[#allocation5 + $0x190] sm:$0xff] }
  0x12   :  { %153 = vmatpush.msra.mxu1 %v120_v7  ;;  %v110_v11 = vld [vmem:[#allocation5 + $0x198] sm:$0xff]  ;;  %v111_v12 = vld [vmem:[#allocation5 + $0x1a0] sm:$0xff]  ;;  %v112_v13 = vld [vmem:[#allocation5 + $0x1a8] sm:$0xff]  ;;  %134 = vmatpush.msra.mxu0 %v115_v8 }
  0x13   :  { %175 = vmatpush.msra.mxu2 %v113_v4  ;;  %195 = vmatpush.msra.mxu3 %v114_v5  ;;  %v105_v14 = vld [vmem:[#allocation5 + $0x170] sm:$0xff]  ;;  %v106_v15 = vld [vmem:[#allocation5 + $0x178] sm:$0xff]  ;;  %v107_v16 = vld [vmem:[#allocation5 + $0x180] sm:$0xff] }
  0x14   :  { %154 = vmatpush.msra.mxu1 %v116_v9  ;;  %v108_v17 = vld [vmem:[#allocation5 + $0x188] sm:$0xff]  ;;  %135 = vmatpush.msra.mxu0 %v111_v12  ;;  %v101_v18 = vld [vmem:[#allocation5 + $0x150] sm:$0xff]  ;;  %v102_v19 = vld [vmem:[#allocation5 + $0x158] sm:$0xff] }
  0x15   :  { %176 = vmatpush.msra.mxu2 %v109_v10  ;;  %196 = vmatpush.msra.mxu3 %v110_v11  ;;  %v103_v20 = vld [vmem:[#allocation5 + $0x160] sm:$0xff]  ;;  %v104_v21 = vld [vmem:[#allocation5 + $0x168] sm:$0xff]  ;;  %v97_v22 = vld [vmem:[#allocation5 + $0x130] sm:$0xff] }
  0x16   :  { %155 = vmatpush.msra.mxu1 %v112_v13  ;;  %136 = vmatpush.msra.mxu0 %v107_v16  ;;  %v98_v23 = vld [vmem:[#allocation5 + $0x138] sm:$0xff]  ;;  %v99_v24 = vld [vmem:[#allocation5 + $0x140] sm:$0xff]  ;;  %v100_v25 = vld [vmem:[#allocation5 + $0x148] sm:$0xff] }
  0x17   :  { %177 = vmatpush.msra.mxu2 %v105_v14  ;;  %197 = vmatpush.msra.mxu3 %v106_v15  ;;  %v93_v26 = vld [vmem:[#allocation5 + $0x110] sm:$0xff]  ;;  %v94_v27 = vld [vmem:[#allocation5 + $0x118] sm:$0xff]  ;;  %v95_v28 = vld [vmem:[#allocation5 + $0x120] sm:$0xff] }
  0x18   :  { %156 = vmatpush.msra.mxu1 %v108_v17  ;;  %137 = vmatpush.msra.mxu0 %v103_v20  ;;  %v96_v29 = vld [vmem:[#allocation5 + $0x128] sm:$0xff]  ;;  %v89_v30 = vld [vmem:[#allocation5 + $0xf0] sm:$0xff]  ;;  %v90_v31 = vld [vmem:[#allocation5 + $0xf8] sm:$0xff] }
  0x19   :  { %178 = vmatpush.msra.mxu2 %v101_v18  ;;  %198 = vmatpush.msra.mxu3 %v102_v19  ;;  %v91_v32 = vld [vmem:[#allocation5 + $0x100] sm:$0xff]  ;;  %v92_v33 = vld [vmem:[#allocation5 + $0x108] sm:$0xff]  ;;  %v85_v34 = vld [vmem:[#allocation5 + $0xd0] sm:$0xff] }
  0x1a   :  { %157 = vmatpush.msra.mxu1 %v104_v21  ;;  %138 = vmatpush.msra.mxu0 %v99_v24  ;;  %v86_v35 = vld [vmem:[#allocation5 + $0xd8] sm:$0xff]  ;;  %v87_v36 = vld [vmem:[#allocation5 + $0xe0] sm:$0xff]  ;;  %v88_v37 = vld [vmem:[#allocation5 + $0xe8] sm:$0xff] }
  0x1b   :  { %179 = vmatpush.msra.mxu2 %v97_v22  ;;  %199 = vmatpush.msra.mxu3 %v98_v23  ;;  %v81_v38 = vld [vmem:[#allocation5 + $0xb0] sm:$0xff]  ;;  %v82_v39 = vld [vmem:[#allocation5 + $0xb8] sm:$0xff]  ;;  %v83_v40 = vld [vmem:[#allocation5 + $0xc0] sm:$0xff] }
  0x1c   :  { %158 = vmatpush.msra.mxu1 %v100_v25  ;;  %139 = vmatpush.msra.mxu0 %v95_v28  ;;  %v84_v41 = vld [vmem:[#allocation5 + $0xc8] sm:$0xff]  ;;  %v77_v42 = vld [vmem:[#allocation5 + $0x90] sm:$0xff]  ;;  %v78_v43 = vld [vmem:[#allocation5 + $0x98] sm:$0xff] }
  0x1d   :  { %180 = vmatpush.msra.mxu2 %v93_v26  ;;  %200 = vmatpush.msra.mxu3 %v94_v27  ;;  %v79_v44 = vld [vmem:[#allocation5 + $0xa0] sm:$0xff]  ;;  %v80_v45 = vld [vmem:[#allocation5 + $0xa8] sm:$0xff]  ;;  %v73_v46 = vld [vmem:[#allocation5 + $0x70] sm:$0xff] }
  0x1e   :  { %159 = vmatpush.msra.mxu1 %v96_v29  ;;  %140 = vmatpush.msra.mxu0 %v91_v32  ;;  %v74_v47 = vld [vmem:[#allocation5 + $0x78] sm:$0xff]  ;;  %v75_v48 = vld [vmem:[#allocation5 + $0x80] sm:$0xff]  ;;  %v76_v49 = vld [vmem:[#allocation5 + $0x88] sm:$0xff] }
  0x1f   :  { %181 = vmatpush.msra.mxu2 %v89_v30  ;;  %201 = vmatpush.msra.mxu3 %v90_v31  ;;  %v69_v50 = vld [vmem:[#allocation5 + $0x50] sm:$0xff]  ;;  %v70_v51 = vld [vmem:[#allocation5 + $0x58] sm:$0xff]  ;;  %v71_v52 = vld [vmem:[#allocation5 + $0x60] sm:$0xff] }
  0x20   :  { %160 = vmatpush.msra.mxu1 %v92_v33  ;;  %141 = vmatpush.msra.mxu0 %v87_v36  ;;  %v72_v53 = vld [vmem:[#allocation5 + $0x68] sm:$0xff]  ;;  %v65_v54 = vld [vmem:[#allocation5 + $0x30] sm:$0xff]  ;;  %v66_v55 = vld [vmem:[#allocation5 + $0x38] sm:$0xff] }
  0x21   :  { %182 = vmatpush.msra.mxu2 %v85_v34  ;;  %202 = vmatpush.msra.mxu3 %v86_v35  ;;  %v67_v56 = vld [vmem:[#allocation5 + $0x40] sm:$0xff]  ;;  %v68_v57 = vld [vmem:[#allocation5 + $0x48] sm:$0xff]  ;;  %v61_v58 = vld [vmem:[#allocation5 + $0x10] sm:$0xff] }
  0x22   :  { %161 = vmatpush.msra.mxu1 %v88_v37  ;;  %142 = vmatpush.msra.mxu0 %v83_v40  ;;  %v62_v59 = vld [vmem:[#allocation5 + $0x18] sm:$0xff]  ;;  %v63_v61 = vld [vmem:[#allocation5 + $0x20] sm:$0xff]  ;;  %v64_v62 = vld [vmem:[#allocation5 + $0x28] sm:$0xff] }
  0x23   :  { %183 = vmatpush.msra.mxu2 %v81_v38  ;;  %203 = vmatpush.msra.mxu3 %v82_v39  ;;  %v58_v60 = vld [vmem:[#allocation2] sm:$0xff]  ;;  %v59_v63 = vld [vmem:[#allocation5] sm:$0xff]  ;;  %v60_v0 = vld [vmem:[#allocation5 + $0x8] sm:$0xff] }
  0x24   :  { %162 = vmatpush.msra.mxu1 %v84_v41  ;;  %143 = vmatpush.msra.mxu0 %v79_v44  ;;  %v123_v1 = vld [vmem:[#allocation7] sm:$0xf] }
  0x25   :  { %184 = vmatpush.msra.mxu2 %v77_v42  ;;  %204 = vmatpush.msra.mxu3 %v78_v43  ;;  %v125_v2 = vperm.slane %v123_v1, 0  ;;  %v126_v3 = vperm.slane %v123_v1, 1  ;;  %v127_v4 = vperm.slane %v123_v1, 2  ;;  %v128_v5 = vperm.slane %v123_v1, 3 }
  0x26   :  { %163 = vmatpush.msra.mxu1 %v80_v45  ;;  %144 = vmatpush.msra.mxu0 %v75_v48 }
  0x27   :  { %185 = vmatpush.msra.mxu2 %v73_v46  ;;  %205 = vmatpush.msra.mxu3 %v74_v47 }
  0x28   :  { %164 = vmatpush.msra.mxu1 %v76_v49  ;;  %145 = vmatpush.msra.mxu0 %v71_v52 }
  0x29   :  { %186 = vmatpush.msra.mxu2 %v69_v50  ;;  %206 = vmatpush.msra.mxu3 %v70_v51 }
  0x2a   :  { %165 = vmatpush.msra.mxu1 %v72_v53  ;;  %146 = vmatpush.msra.mxu0 %v67_v56 }
  0x2b   :  { %187 = vmatpush.msra.mxu2 %v65_v54  ;;  %207 = vmatpush.msra.mxu3 %v66_v55 }
  0x2c   :  { %166 = vmatpush.msra.mxu1 %v68_v57  ;;  %147 = vmatpush.msra.mxu0 %v63_v61 }
  0x2d   :  { %188 = vmatpush.msra.mxu2 %v61_v58  ;;  %208 = vmatpush.msra.mxu3 %v62_v59 }
  0x2e   :  { %189 = vmatmul.f32.vlgmr.msra.gmra.mxu2 %v58_v60  ;;  %209 = vmatmul.f32.vlgmr.msra.gmra.mxu3 %v58_v60 }
  0x2f   :  { %167 = vmatpush.msra.mxu1 %v64_v62  ;;  %148 = vmatpush.msra.mxu0 %v59_v63 }
  0x30   :  { %149 = vmatmul.f32.vlgmr.msra.gmra.mxu0 %v58_v60 }
  0x31   :  { %168 = vmatpush.msra.mxu1 %v60_v0 }
  0x32   :  { %169 = vmatmul.f32.vlgmr.msra.gmra.mxu1 %v58_v60 }
  0xad   :  { %v150_v6 = vpop.f32.mrf.mxu0 }
  0xae   :  { %v151_v8 = vadd.f32 %v150_v6, %v125_v2 }
  0xaf   :  { %v170_v7 = vpop.f32.mrf.mxu1 }
  0xb0   :  { %v171_v9 = vadd.f32 %v170_v7, %v126_v3  ;;  %213 = vst [vmem:[#allocation8] sm:$0xff] %v151_v8 }
  0xb1   :  { %v190_v10 = vpop.f32.mrf.mxu2  ;;  %v210_v11 = vpop.f32.mrf.mxu3 }
  0xb2   :  { %v191_v12 = vadd.f32 %v190_v10, %v127_v4  ;;  %v211_v13 = vadd.f32 %v210_v11, %v128_v5  ;;  %214 = vst [vmem:[#allocation8 + $0x8] sm:$0xff] %v171_v9 }
  0xb4   :  { %215 = vst [vmem:[#allocation8 + $0x10] sm:$0xff] %v191_v12 }
  0xb5   :  { %216 = vst [vmem:[#allocation8 + $0x18] sm:$0xff] %v211_v13 }
  0xb6   :  { %227 = dma.vmem_to_hbm [thread:$0]  %s223_s2, 512, %s225_s30, [#allocation4]  }
  0xb7   :  { %341 = dma.done.wait [#allocation4], 512  }
  0xb8   :  { %342 = vsyncadd [#allocation4], 4294966784 }
  0xb9   :  { %232 = vsyncpa [#allocation3], 1 }
  0xba   :  { %233 = vsyncpa [#allocation6], 1 }
  0xbb   :  { %234 = vsyncpa [#allocation4], 1 }

</bundles_post_ra>
